<compile_context>
chip_gen: v7x
topology: tpu7x:2x2x1
jax: 0.10.0
libtpu: 0.0.40
codegen_flags: <defaults>
</compile_context>

<pallas_src>
import functools

import jax
import jax.numpy as jnp
from jax.experimental import pallas as pl
from jax.experimental.pallas import tpu as pltpu

LANE = 128
SUB = 8


def _round_up(x, m):
    return (x + m - 1) // m * m


def _cdiv(a, b):
    return (a + b - 1) // b


def fusion_cls_kernel(x_ref, w_ref, b_ref, out_ref, acc_ref, *, inv_hw):
    # x_ref:   [TILE_N, C, TILE_S]  one spatial tile of the NCHW-flattened input
    # w_ref:   [C, Kp]              fc weight (transposed, K padded), resident
    # b_ref:   [1, Kp]              fc bias (padded), resident
    # out_ref: [TILE_N, Kp]         logits tile (same block across spatial axis)
    # acc_ref: [TILE_N, C, 128]     f32 lane-group partial sums over H*W (scratch)
    j = pl.program_id(1)

    @pl.when(j == 0)
    def _():
        acc_ref[...] = jnp.zeros_like(acc_ref)

    # Fold the tile over 128-lane groups with VPU adds only (128-aligned lane
    # slices are vreg-aligned, no relayout); the cross-lane reduce is deferred
    # to the final step so the streaming loop stays on the VPU.
    x = x_ref[...].astype(jnp.float32)                 # [TILE_N, C, TILE_S]
    n_groups = x.shape[-1] // LANE
    part = x[:, :, 0:LANE]
    for g in range(1, n_groups):
        part = part + x[:, :, g * LANE:(g + 1) * LANE]
    acc_ref[...] += part

    @pl.when(j == pl.num_programs(1) - 1)
    def _():
        # Single cross-lane reduce -> pooled features, then fused FC on the MXU.
        pooled = jnp.sum(acc_ref[...], axis=-1) * inv_hw          # [TILE_N, C]
        logits = jnp.dot(pooled, w_ref[...],
                         preferred_element_type=jnp.float32) + b_ref[...]
        out_ref[...] = logits.astype(out_ref.dtype)


def fusion_classification_forward(x_nchw, fc_w, fc_b):
    """x_nchw: [N, C, H, W]; fc_w: [num_classes, C]; fc_b: [num_classes].
    Returns logits [N, num_classes], matching fc(flatten(avgpool(x)))."""
    N, C, H, W = x_nchw.shape
    K = fc_w.shape[0]
    S = H * W

    # Native layout: pure reshape (contiguous), no transpose pass, arrival dtype.
    x_ncs = x_nchw.reshape(N, C, S)
    itemsize = jnp.dtype(x_ncs.dtype).itemsize

    # ---- Spatial tiling: multiple of 128 on the lane axis, dividing Sp. ----
    Sp = _round_up(S, LANE)
    MAX_TILE_S = 2048
    if Sp <= MAX_TILE_S:
        TILE_S = Sp
    else:
        TILE_S = LANE
        for t in range(MAX_TILE_S, LANE - 1, -LANE):
            if Sp % t == 0:
                TILE_S = t
                break

    # ---- Batch tiling: ~8 MiB per input buffer, >=2 batch tiles when N allows.
    bytes_per_row = C * TILE_S * itemsize
    TARGET_TILE_BYTES = 8 * 1024 * 1024
    tn_by_bytes = max(SUB, (TARGET_TILE_BYTES // max(bytes_per_row, 1)) // SUB * SUB)
    tn_two_tiles = max(SUB, _round_up(_cdiv(N, 2), SUB))   # keep both v7x TCs busy
    TILE_N = min(tn_by_bytes, tn_two_tiles, 1024)
    Np = _round_up(N, TILE_N)

    if (Np, Sp) != (N, S):
        # Zero padding: padded spatial columns add 0 to the sums (mean divides by
        # the true H*W); padded batch rows produce bias-only logits, sliced off.
        x_ncs = jnp.pad(x_ncs, ((0, Np - N), (0, 0), (0, Sp - S)))

    # FC parameters: tiny, padded only along num_classes for a lane-dense output.
    Kp = _round_up(K, LANE)
    w_pad = jnp.pad(jnp.transpose(fc_w, (1, 0)).astype(jnp.float32),
                    ((0, 0), (0, Kp - K)))                 # [C, Kp]
    b_pad = jnp.pad(fc_b.astype(jnp.float32).reshape(1, K),
                    ((0, 0), (0, Kp - K)))                 # [1, Kp]

    grid = (Np // TILE_N, Sp // TILE_S)

    # VMEM budget: double-buffered x + output + resident params + acc scratch,
    # plus slack; capped at 48 MiB so v7x (64 MiB/TC) keeps compiler headroom.
    vmem_need = (2 * TILE_N * C * TILE_S * itemsize
                 + 2 * TILE_N * Kp * 4
                 + 2 * (C * Kp + Kp) * 4
                 + TILE_N * C * LANE * 4)
    vmem_limit = int(min(48 * 1024 * 1024, max(vmem_need + (4 << 20), 16 << 20)))

    kernel = functools.partial(fusion_cls_kernel, inv_hw=1.0 / float(S))

    out_pad = pl.pallas_call(
        kernel,
        out_shape=jax.ShapeDtypeStruct((Np, Kp), jnp.float32),
        grid_spec=pltpu.PrefetchScalarGridSpec(
            num_scalar_prefetch=0,
            grid=grid,
            in_specs=[
                pl.BlockSpec((TILE_N, C, TILE_S), lambda i, j: (i, 0, j)),
                pl.BlockSpec((C, Kp), lambda i, j: (0, 0)),    # resident weight
                pl.BlockSpec((1, Kp), lambda i, j: (0, 0)),    # resident bias
            ],
            out_specs=pl.BlockSpec((TILE_N, Kp), lambda i, j: (i, 0)),
            scratch_shapes=[pltpu.VMEM((TILE_N, C, LANE), jnp.float32)],
        ),
        compiler_params=pltpu.CompilerParams(
            dimension_semantics=("parallel", "arbitrary"),
            vmem_limit_bytes=vmem_limit,
        ),
    )(x_ncs, w_pad, b_pad)

    return out_pad[:N, :K]


def _reference_forward(x_nchw, fc_w, fc_b):
    pooled = jnp.mean(x_nchw.astype(jnp.float32), axis=(2, 3))   # [N, C]
    return pooled @ fc_w.astype(jnp.float32).T + fc_b.astype(jnp.float32)


if __name__ == "__main__":
    # Small shapes consistent with the module: x = self.storage [N, C, H, W],
    # fc: Linear(in_channels=C, num_classes=K).
    N, C, H, W = 2, 32, 16, 16
    K = 8

    key = jax.random.PRNGKey(0)
    kx, kw, kb = jax.random.split(key, 3)
    x = jax.random.normal(kx, (N, C, H, W), dtype=jnp.float32)
    fc_w = 0.1 * jax.random.normal(kw, (K, C), dtype=jnp.float32)
    fc_b = 0.01 * jax.random.normal(kb, (K,), dtype=jnp.float32)

    out = fusion_classification_forward(x, fc_w, fc_b)
    out = jax.block_until_ready(out)

    ref = _reference_forward(x, fc_w, fc_b)
    assert out.shape == (N, K), out.shape
    assert jnp.allclose(out, ref, atol=1e-4, rtol=1e-4), float(jnp.max(jnp.abs(out - ref)))

    # TODO(synk): the PyTorch forward reads self.storage, pushes the result onto
    # edge objects and returns None; that graph plumbing has no tensor equivalent,
    # so we return the computed logits instead.
    print("KERNEL_OK")
</pallas_src>

<mosaic_0001>
module attributes {stable_mosaic.version = 11 : i64} {
  func.func @fusion_cls_kernel(%arg0: i32, %arg1: i32, %arg2: memref<8x32x256xf32, #tpu.memory_space<vmem>>, %arg3: memref<32x128xf32, #tpu.memory_space<vmem>>, %arg4: memref<1x128xf32, #tpu.memory_space<vmem>>, %arg5: memref<8x128xf32, #tpu.memory_space<vmem>>, %arg6: memref<8x32x128xf32, #tpu.memory_space<vmem>>) attributes {dimension_semantics = [#tpu.dimension_semantics<parallel>, #tpu.dimension_semantics<arbitrary>], iteration_bounds = array<i64: 1, 1>, scalar_prefetch = 0 : i64, scratch_operands = 1 : i64, tpu.core_type = #tpu.core_type<tc>, window_params = [{transform_indices = @transform_0, window_bounds = array<i64: 8, 32, 256>}, {pipeline_mode = #tpu.pipeline_mode<synchronous>, transform_indices = @transform_1, window_bounds = array<i64: 32, 128>}, {pipeline_mode = #tpu.pipeline_mode<synchronous>, transform_indices = @transform_2, window_bounds = array<i64: 1, 128>}, {transform_indices = @transform_3, window_bounds = array<i64: 8, 128>}]} {
    %c0_i32 = arith.constant 0 : i32
    %0 = arith.cmpi eq, %arg1, %c0_i32 : i32
    %1 = arith.extui %0 : i1 to i32
    %c0_i32_0 = arith.constant 0 : i32
    %2 = arith.cmpi ne, %1, %c0_i32_0 : i32
    scf.if %2 {
      %cst = arith.constant 0.000000e+00 : f32
      %13 = vector.broadcast %cst : f32 to vector<8x32x128xf32>
      %c0_11 = arith.constant 0 : index
      %c0_12 = arith.constant 0 : index
      %c0_13 = arith.constant 0 : index
      %14 = vector.load %arg6[%c0_11, %c0_12, %c0_13] : memref<8x32x128xf32, #tpu.memory_space<vmem>>, vector<8x32x128xf32>
      tpu.vector_store %arg6[%c0_11, %c0_12, %c0_13], %13 {strides = array<i32>} : memref<8x32x128xf32, #tpu.memory_space<vmem>>, vector<8x32x128xf32>,
    } else {
    }
    %c0 = arith.constant 0 : index
    %c0_1 = arith.constant 0 : index
    %c0_2 = arith.constant 0 : index
    %3 = vector.load %arg2[%c0, %c0_1, %c0_2] : memref<8x32x256xf32, #tpu.memory_space<vmem>>, vector<8x32x256xf32>
    %4 = vector.extract_strided_slice %3 {offsets = [0, 0, 0], sizes = [8, 32, 128], strides = [1, 1, 1]} : vector<8x32x256xf32> to vector<8x32x128xf32>
    %5 = vector.extract_strided_slice %3 {offsets = [0, 0, 128], sizes = [8, 32, 128], strides = [1, 1, 1]} : vector<8x32x256xf32> to vector<8x32x128xf32>
    %6 = arith.addf %4, %5 : vector<8x32x128xf32>
    %c0_3 = arith.constant 0 : index
    %c0_4 = arith.constant 0 : index
    %c0_5 = arith.constant 0 : index
    %7 = vector.load %arg6[%c0_3, %c0_4, %c0_5] : memref<8x32x128xf32, #tpu.memory_space<vmem>>, vector<8x32x128xf32>
    %8 = arith.addf %7, %6 : vector<8x32x128xf32>
    %c0_6 = arith.constant 0 : index
    %c0_7 = arith.constant 0 : index
    %c0_8 = arith.constant 0 : index
    %9 = vector.load %arg6[%c0_6, %c0_7, %c0_8] : memref<8x32x128xf32, #tpu.memory_space<vmem>>, vector<8x32x128xf32>
    tpu.vector_store %arg6[%c0_6, %c0_7, %c0_8], %8 {strides = array<i32>} : memref<8x32x128xf32, #tpu.memory_space<vmem>>, vector<8x32x128xf32>,
    %c0_i32_9 = arith.constant 0 : i32
    %10 = arith.cmpi eq, %arg1, %c0_i32_9 : i32
    %11 = arith.extui %10 : i1 to i32
    %c0_i32_10 = arith.constant 0 : i32
    %12 = arith.cmpi ne, %11, %c0_i32_10 : i32
    scf.if %12 {
      %c0_11 = arith.constant 0 : index
      %c0_12 = arith.constant 0 : index
      %c0_13 = arith.constant 0 : index
      %13 = vector.load %arg6[%c0_11, %c0_12, %c0_13] : memref<8x32x128xf32, #tpu.memory_space<vmem>>, vector<8x32x128xf32>
      %cst = arith.constant dense<0.000000e+00> : vector<8x32xf32>
      %14 = vector.multi_reduction <add>, %13, %cst [2] : vector<8x32x128xf32> to vector<8x32xf32>
      %cst_14 = arith.constant 3.906250e-03 : f32
      %15 = vector.broadcast %cst_14 : f32 to vector<8x32xf32>
      %16 = arith.mulf %14, %15 : vector<8x32xf32>
      %c0_15 = arith.constant 0 : index
      %c0_16 = arith.constant 0 : index
      %17 = vector.load %arg3[%c0_15, %c0_16] : memref<32x128xf32, #tpu.memory_space<vmem>>, vector<32x128xf32>
      %cst_17 = arith.constant dense<0.000000e+00> : vector<8x128xf32>
      %18 = tpu.matmul %16, %17, %cst_17 {dimension_numbers = #tpu.dot_dimension_numbers<[1], [0], [0], [1], [0, 0, 1, 1], [], []>} : vector<8x32xf32>, vector<32x128xf32>, vector<8x128xf32> -> vector<8x128xf32>
      %c0_18 = arith.constant 0 : index
      %c0_19 = arith.constant 0 : index
      %19 = vector.load %arg4[%c0_18, %c0_19] : memref<1x128xf32, #tpu.memory_space<vmem>>, vector<1x128xf32>
      %20 = vector.broadcast %19 : vector<1x128xf32> to vector<8x128xf32>
      %21 = arith.addf %18, %20 : vector<8x128xf32>
      %c0_20 = arith.constant 0 : index
      %c0_21 = arith.constant 0 : index
      %22 = vector.load %arg5[%c0_20, %c0_21] : memref<8x128xf32, #tpu.memory_space<vmem>>, vector<8x128xf32>
      tpu.vector_store %arg5[%c0_20, %c0_21], %21 {strides = array<i32>} : memref<8x128xf32, #tpu.memory_space<vmem>>, vector<8x128xf32>,
    } else {
    }
    return
  }
  func.func @transform_0(%arg0: i32, %arg1: i32) -> (i32, i32, i32) {
    %c0_i32 = arith.constant 0 : i32
    %c0_i32_0 = arith.constant 0 : i32
    return %arg0, %c0_i32, %arg1 : i32, i32, i32
  }
  func.func @transform_1(%arg0: i32, %arg1: i32) -> (i32, i32) {
    %c0_i32 = arith.constant 0 : i32
    %c0_i32_0 = arith.constant 0 : i32
    %c0_i32_1 = arith.constant 0 : i32
    return %c0_i32, %c0_i32_0 : i32, i32
  }
  func.func @transform_2(%arg0: i32, %arg1: i32) -> (i32, i32) {
    %c0_i32 = arith.constant 0 : i32
    %c0_i32_0 = arith.constant 0 : i32
    %c0_i32_1 = arith.constant 0 : i32
    return %c0_i32, %c0_i32_0 : i32, i32
  }
  func.func @transform_3(%arg0: i32, %arg1: i32) -> (i32, i32) {
    %c0_i32 = arith.constant 0 : i32
    %c0_i32_0 = arith.constant 0 : i32
    return %arg0, %c0_i32 : i32, i32
  }
}

</mosaic_0001>

<bundles_post_ra>
// kernel: tpu_custom_call.1
= control target key start
LH: loop header
LB: loop body
LE: loop exit
PB: predicated region body
PF: predicated region fallthrough
CT: control target
= control target key end

     0   :  { %8 = vsyncpa [#allocation4], 0  ;;  %s957_s0 = inlined_call_operand.hbm [shape: f32[8,32,256], index: 0, kind: input, shape index: {}]   ;;  %s958_s1 = inlined_call_operand.hbm [shape: f32[32,128], index: 1, kind: input, shape index: {}]   ;;  %s959_s2 = inlined_call_operand.vmem [shape: f32[1,128], index: 2, kind: input, shape index: {}]   ;;  %s960_s3 = inlined_call_operand.hbm [shape: f32[8,128], index: 3, kind: output, shape index: {}]  }
   0x1   :  { %9 = vsyncpa [#allocation7], 0 }
   0x2   :  { %10 = vsyncpa [#allocation5], 0  ;;  %s815_s12 = smov [#allocation3]   ;;  %s743_s16 = scalar_lea.hbm %s957_s0, 8192 }
   0x3   :  { %s16_s13 = sshll.u32 %s815_s12, 4  ;;  %p744_p0 = scmp.ne.s32.totalorder %s957_s0, %s743_s16  ;;  %s17_s13 = int_to_ptr.vmem [resolvable:$true] %s16_s13 }
   0x4   :  { %p747_p1 = scmp.lt.u32.totalorder %s743_s16, %s957_s0 }
   0x6   :  { %p749_p2 = pnand %p747_p1, %p744_p0 }
   0x8   :  { %752 = shalt.err (!%p749_p2)
}
   0x9   :  { %s753_s21 = scalar_lea.vmem %s17_s13, 8192  ;;  %p758_p4 = scmp.lt.s32.totalorder %s17_s13, %s17_s13 }
   0xa   :  { %p754_p3 = scmp.ne.s32.totalorder %s17_s13, %s753_s21  ;;  %p759_p5 = scmp.lt.s32.totalorder %s753_s21, %s753_s21 }
   0xc   :  { %p760_p6 = por %p759_p5, %p758_p4 }
   0xe   :  { %p761_p7 = pnand %p760_p6, %p754_p3 }
  0x10   :  { %764 = shalt.err (!%p761_p7)
}
  0x11   :  { %s816_s22 = smov 256   ;;  %s817_s23 = smov 16  }
  0x12   :  { %22 = dma.hbm_to_vmem [thread:$0]  %s957_s0, 8192, %s17_s13, [#allocation4], %s816_s22, %s816_s22, %s817_s23  }
  0x13   :  { %s818_s26 = smov [#allocation6]   ;;  %s765_s30 = scalar_lea.hbm %s958_s1, 512 }
  0x14   :  { %s28_s27 = sshll.u32 %s818_s26, 4  ;;  %p766_p8 = scmp.ne.s32.totalorder %s958_s1, %s765_s30  ;;  %s29_s27 = int_to_ptr.vmem [resolvable:$true] %s28_s27 }
  0x15   :  { %p769_p9 = scmp.lt.u32.totalorder %s765_s30, %s958_s1 }
  0x17   :  { %p771_p10 = pnand %p769_p9, %p766_p8 }
  0x19   :  { %774 = shalt.err (!%p771_p10)
}
  0x1a   :  { %s775_s8 = scalar_lea.vmem %s29_s27, 512  ;;  %p780_p12 = scmp.lt.s32.totalorder %s29_s27, %s29_s27 }
  0x1b   :  { %p776_p11 = scmp.ne.s32.totalorder %s29_s27, %s775_s8  ;;  %p781_p13 = scmp.lt.s32.totalorder %s775_s8, %s775_s8 }
  0x1d   :  { %p782_p0 = por %p781_p13, %p780_p12 }
  0x1f   :  { %p783_p1 = pnand %p782_p0, %p776_p11 }
  0x21   :  { %786 = shalt.err (!%p783_p1)
}
  0x22   :  { %s819_s0 = smov 128   ;;  %s820_s9 = smov 8  }
  0x23   :  { %34 = dma.hbm_to_vmem [thread:$0]  %s958_s1, 512, %s29_s27, [#allocation7], %s819_s0, %s819_s0, %s820_s9  }
  0x24   :  { %809 = dma.done.wait [#allocation4], 8192  }
  0x25   :  { %810 = vsyncadd [#allocation4], 4294959104 }
  0x26   :  { %811 = dma.done.wait [#allocation7], 512  }
  0x27   :  { %812 = vsyncadd [#allocation7], 4294966784  ;;  %v87_v0 = vld [vmem:[#allocation3 + $0x40] sm:$0xff]  ;;  %v88_v1 = vld [vmem:[#allocation3 + $0x48] sm:$0xff]  ;;  %vm822_vm0 = vmmov 0   ;;  %vm456_vm1 = vcmask 130112  }
  0x28   :  { %v79_v2 = vld [vmem:[#allocation3] sm:$0xff]  ;;  %v147_v3 = vadd.f32 %v88_v1, %v87_v0  ;;  %v80_v4 = vld [vmem:[#allocation3 + $0x8] sm:$0xff]  ;;  %v89_v5 = vld [vmem:[#allocation3 + $0x50] sm:$0xff]  ;;  %vm463_vm2 = vcmask 195712   ;;  %vm470_vm3 = vcmask 261312   ;;  %vm605_vm4 = vcmask 1041409  }
  0x29   :  { %v90_v6 = vld [vmem:[#allocation3 + $0x58] sm:$0xff]  ;;  %v143_v7 = vadd.f32 %v80_v4, %v79_v2  ;;  %v81_v8 = vld [vmem:[#allocation3 + $0x10] sm:$0xff]  ;;  %v91_v12 = vld [vmem:[#allocation3 + $0x60] sm:$0xff]  ;;  %vm607_vm5 = vcmask 1042434   ;;  %vm609_vm6 = vcmask 1043459   ;;  %vm611_vm7 = vcmask 1044484  }
  0x2a   :  { %v82_v9 = vld [vmem:[#allocation3 + $0x18] sm:$0xff]  ;;  %314 = vadd.xlane.f32.xlu1 %v147_v3  ;;  %v148_v10 = vadd.f32 %v90_v6, %v89_v5  ;;  %v92_v13 = vld [vmem:[#allocation3 + $0x68] sm:$0xff]  ;;  %v83_v14 = vld [vmem:[#allocation3 + $0x20] sm:$0xff]  ;;  %vm613_vm8 = vcmask 1045509   ;;  %vm615_vm9 = vcmask 1046534   ;;  %vm617_vm10 = vcmask 1047559  }
  0x2b   :  { %306 = vadd.xlane.f32.xlu0 %v143_v7  ;;  %v144_v11 = vadd.f32 %v82_v9, %v81_v8  ;;  %v84_v15 = vld [vmem:[#allocation3 + $0x28] sm:$0xff]  ;;  %v149_v16 = vadd.f32 %v92_v13, %v91_v12  ;;  %v97_v18 = vld [vmem:[#allocation3 + $0x90] sm:$0xff]  ;;  %v98_v19 = vld [vmem:[#allocation3 + $0x98] sm:$0xff]  ;;  %vm619_vm11 = vcmask 261120   ;;  %s824_s13 = smov [#allocation8]  }
  0x2c   :  { %v145_v17 = vadd.f32 %v84_v15, %v83_v14  ;;  %v95_v20 = vld [vmem:[#allocation3 + $0x80] sm:$0xff]  ;;  %v96_v21 = vld [vmem:[#allocation3 + $0x88] sm:$0xff]  ;;  %v152_v22 = vadd.f32 %v98_v19, %v97_v18  ;;  %v93_v24 = vld [vmem:[#allocation3 + $0x70] sm:$0xff]  ;;  %s699_s14 = sshll.u32 %s824_s13, 4  ;;  %s700_s14 = int_to_ptr.vmem [resolvable:$true] %s699_s14 }
  0x2d   :  { %v151_v23 = vadd.f32 %v96_v21, %v95_v20  ;;  %v94_v25 = vld [vmem:[#allocation3 + $0x78] sm:$0xff]  ;;  %v85_v26 = vld [vmem:[#allocation3 + $0x30] sm:$0xff]  ;;  %v103_v30 = vld [vmem:[#allocation3 + $0xc0] sm:$0xff]  ;;  %s787_s15 = scalar_lea.vmem %s700_s14, 128  ;;  %p792_p3 = scmp.lt.s32.totalorder %s700_s14, %s700_s14 }
  0x2e   :  { %316 = vadd.xlane.f32.xlu1 %v148_v10  ;;  %v86_v27 = vld [vmem:[#allocation3 + $0x38] sm:$0xff]  ;;  %v150_v28 = vadd.f32 %v94_v25, %v93_v24  ;;  %v104_v31 = vld [vmem:[#allocation3 + $0xc8] sm:$0xff]  ;;  %v99_v32 = vld [vmem:[#allocation3 + $0xa0] sm:$0xff]  ;;  %p788_p2 = scmp.ne.s32.totalorder %s700_s14, %s787_s15  ;;  %p793_p4 = scmp.lt.s32.totalorder %s787_s15, %s787_s15 }
  0x2f   :  { %308 = vadd.xlane.f32.xlu0 %v144_v11  ;;  %v146_v29 = vadd.f32 %v86_v27, %v85_v26  ;;  %v100_v33 = vld [vmem:[#allocation3 + $0xa8] sm:$0xff]  ;;  %v155_v34 = vadd.f32 %v104_v31, %v103_v30  ;;  %v101_v36 = vld [vmem:[#allocation3 + $0xb0] sm:$0xff]  ;;  %v102_v37 = vld [vmem:[#allocation3 + $0xb8] sm:$0xff] }
  0x30   :  { %v153_v35 = vadd.f32 %v100_v33, %v99_v32  ;;  %v105_v38 = vld [vmem:[#allocation3 + $0xd0] sm:$0xff]  ;;  %v106_v39 = vld [vmem:[#allocation3 + $0xd8] sm:$0xff]  ;;  %v154_v40 = vadd.f32 %v102_v37, %v101_v36  ;;  %v111_v42 = vld [vmem:[#allocation3 + $0x100] sm:$0xff]  ;;  %p794_p5 = por %p793_p4, %p792_p3 }
  0x31   :  { %v156_v41 = vadd.f32 %v106_v39, %v105_v38  ;;  %v112_v43 = vld [vmem:[#allocation3 + $0x108] sm:$0xff]  ;;  %v107_v44 = vld [vmem:[#allocation3 + $0xe0] sm:$0xff]  ;;  %v109_v48 = vld [vmem:[#allocation3 + $0xf0] sm:$0xff]  ;;  %v823_v39 = vmov 0.0  }
  0x32   :  { %318 = vadd.xlane.f32.xlu1 %v149_v16  ;;  %v108_v45 = vld [vmem:[#allocation3 + $0xe8] sm:$0xff]  ;;  %v159_v46 = vadd.f32 %v112_v43, %v111_v42  ;;  %v110_v49 = vld [vmem:[#allocation3 + $0xf8] sm:$0xff]  ;;  %v113_v50 = vld [vmem:[#allocation3 + $0x110] sm:$0xff]  ;;  %724 = vmatprep.mubr.msk.f32.mxu0 %vm822_vm0, %v823_v39  ;;  %p795_p6 = pnand %p794_p5, %p788_p2 }
  0x33   :  { %310 = vadd.xlane.f32.xlu0 %v145_v17  ;;  %v157_v47 = vadd.f32 %v108_v45, %v107_v44  ;;  %v114_v51 = vld [vmem:[#allocation3 + $0x118] sm:$0xff]  ;;  %v158_v52 = vadd.f32 %v110_v49, %v109_v48  ;;  %v119_v54 = vld [vmem:[#allocation3 + $0x140] sm:$0xff]  ;;  %v120_v55 = vld [vmem:[#allocation3 + $0x148] sm:$0xff] }
  0x34   :  { %v160_v53 = vadd.f32 %v114_v51, %v113_v50  ;;  %v115_v56 = vld [vmem:[#allocation3 + $0x120] sm:$0xff]  ;;  %v116_v57 = vld [vmem:[#allocation3 + $0x128] sm:$0xff]  ;;  %v163_v58 = vadd.f32 %v120_v55, %v119_v54  ;;  %v117_v60 = vld [vmem:[#allocation3 + $0x130] sm:$0xff]  ;;  %v445_v54 = vlaneseq }
  0x35   :  { %v161_v59 = vadd.f32 %v116_v57, %v115_v56  ;;  %v118_v61 = vld [vmem:[#allocation3 + $0x138] sm:$0xff]  ;;  %v121_v62 = vld [vmem:[#allocation3 + $0x150] sm:$0xff]  ;;  %v127_v2 = vld [vmem:[#allocation3 + $0x180] sm:$0xff] }
  0x36   :  { %324 = vadd.xlane.f32.xlu1 %v152_v22  ;;  %v122_v63 = vld [vmem:[#allocation3 + $0x158] sm:$0xff]  ;;  %v162_v0 = vadd.f32 %v118_v61, %v117_v60  ;;  %v128_v3 = vld [vmem:[#allocation3 + $0x188] sm:$0xff]  ;;  %v123_v4 = vld [vmem:[#allocation3 + $0x160] sm:$0xff]  ;;  %v446_v57 = vand.u32 127, %v445_v54  ;;  %v448_v60 = vshrl.u32 %v445_v54, 7 }
  0x37   :  { %322 = vadd.xlane.f32.xlu0 %v151_v23  ;;  %v164_v1 = vadd.f32 %v122_v63, %v121_v62  ;;  %v124_v5 = vld [vmem:[#allocation3 + $0x168] sm:$0xff]  ;;  %v167_v6 = vadd.f32 %v128_v3, %v127_v2  ;;  %v125_v8 = vld [vmem:[#allocation3 + $0x170] sm:$0xff]  ;;  %v126_v9 = vld [vmem:[#allocation3 + $0x178] sm:$0xff] }
  0x38   :  { %v165_v7 = vadd.f32 %v124_v5, %v123_v4  ;;  %v129_v10 = vld [vmem:[#allocation3 + $0x190] sm:$0xff]  ;;  %v130_v11 = vld [vmem:[#allocation3 + $0x198] sm:$0xff]  ;;  %v166_v12 = vadd.f32 %v126_v9, %v125_v8  ;;  %v135_v14 = vld [vmem:[#allocation3 + $0x1c0] sm:$0xff]  ;;  %v451_v61 = vadd.s32 4294967288, %v446_v57  ;;  %v458_v62 = vadd.s32 4294967280, %v446_v57 }
  0x39   :  { %v168_v13 = vadd.f32 %v130_v11, %v129_v10  ;;  %v136_v15 = vld [vmem:[#allocation3 + $0x1c8] sm:$0xff]  ;;  %v131_v16 = vld [vmem:[#allocation3 + $0x1a0] sm:$0xff]  ;;  %v133_v20 = vld [vmem:[#allocation3 + $0x1b0] sm:$0xff]  ;;  %v465_v63 = vadd.s32 4294967272, %v446_v57  ;;  %v873_v2 = vsub.s32 %v446_v57, %v448_v60 }
  0x3a   :  { %320 = vadd.xlane.f32.xlu1 %v150_v28  ;;  %v132_v17 = vld [vmem:[#allocation3 + $0x1a8] sm:$0xff]  ;;  %v171_v18 = vadd.f32 %v136_v15, %v135_v14  ;;  %v134_v21 = vld [vmem:[#allocation3 + $0x1b8] sm:$0xff]  ;;  %v137_v22 = vld [vmem:[#allocation3 + $0x1d0] sm:$0xff]  ;;  %v875_v3 = vsub.s32 %v451_v61, %v448_v60 }
  0x3b   :  { %312 = vadd.xlane.f32.xlu0 %v146_v29  ;;  %v169_v19 = vadd.f32 %v132_v17, %v131_v16  ;;  %v138_v23 = vld [vmem:[#allocation3 + $0x1d8] sm:$0xff]  ;;  %v170_v24 = vadd.f32 %v134_v21, %v133_v20  ;;  %v141_v26 = vld [vmem:[#allocation3 + $0x1f0] sm:$0xff]  ;;  %v139_v28 = vld [vmem:[#allocation3 + $0x1e0] sm:$0xff] }
  0x3c   :  { %v172_v25 = vadd.f32 %v138_v23, %v137_v22  ;;  %v142_v27 = vld [vmem:[#allocation3 + $0x1f8] sm:$0xff]  ;;  %v140_v29 = vld [vmem:[#allocation3 + $0x1e8] sm:$0xff]  ;;  %v402_v32 = vld [vmem:[#allocation6] sm:$0xff] }
  0x3d   :  { %v174_v30 = vadd.f32 %v142_v27, %v141_v26  ;;  %v173_v31 = vadd.f32 %v140_v29, %v139_v28  ;;  %v403_v33 = vld [vmem:[#allocation6 + $0x8] sm:$0xff]  ;;  %v404_v36 = vld [vmem:[#allocation6 + $0x10] sm:$0xff]  ;;  %v405_v37 = vld [vmem:[#allocation6 + $0x18] sm:$0xff] }
  0x3e   :  { %330 = vadd.xlane.f32.xlu1 %v155_v34  ;;  %v728_v34 = vpack.c.bf16 %v403_v33, %v402_v32  ;;  %v731_v38 = vpack.c.bf16 %v405_v37, %v404_v36 }
  0x3f   :  { %326 = vadd.xlane.f32.xlu0 %v153_v35  ;;  %v821_v35 = vmov 0.0|0.0  }
  0x40   :  { %727 = vmatprep.subr.bf16.mxu0 %v821_v35 }
  0x41   :  { %729 = vmatpush3.bf16.msra.mxu0 %v728_v34 }
  0x42   :  { %328 = vadd.xlane.f32.xlu1 %v154_v40  ;;  %730 = vmatprep.subr.bf16.mxu0 %v821_v35 }
  0x43   :  { %332 = vadd.xlane.f32.xlu0 %v156_v41 }
  0x45   :  { %732 = vmatpush3.bf16.msra.mxu0 %v731_v38 }
  0x46   :  { %338 = vadd.xlane.f32.xlu1 %v159_v46 }
  0x47   :  { %334 = vadd.xlane.f32.xlu0 %v157_v47 }
  0x4a   :  { %336 = vadd.xlane.f32.xlu1 %v158_v52 }
  0x4b   :  { %340 = vadd.xlane.f32.xlu0 %v160_v53 }
  0x4e   :  { %346 = vadd.xlane.f32.xlu1 %v163_v58 }
  0x4f   :  { %342 = vadd.xlane.f32.xlu0 %v161_v59 }
  0x52   :  { %344 = vadd.xlane.f32.xlu1 %v162_v0 }
  0x53   :  { %348 = vadd.xlane.f32.xlu0 %v164_v1 }
  0x56   :  { %354 = vadd.xlane.f32.xlu1 %v167_v6  ;;  %v877_v6 = vsub.s32 %v458_v62, %v448_v60 }
  0x57   :  { %350 = vadd.xlane.f32.xlu0 %v165_v7  ;;  %v879_v7 = vsub.s32 %v465_v63, %v448_v60 }
  0x5a   :  { %352 = vadd.xlane.f32.xlu1 %v166_v12 }
  0x5b   :  { %356 = vadd.xlane.f32.xlu0 %v168_v13 }
  0x5e   :  { %362 = vadd.xlane.f32.xlu1 %v171_v18 }
  0x5f   :  { %358 = vadd.xlane.f32.xlu0 %v169_v19 }
  0x62   :  { %360 = vadd.xlane.f32.xlu1 %v170_v24 }
  0x63   :  { %364 = vadd.xlane.f32.xlu0 %v172_v25 }
  0x66   :  { %368 = vadd.xlane.f32.xlu1 %v174_v30 }
  0x67   :  { %366 = vadd.xlane.f32.xlu0 %v173_v31 }
  0xb7   :  { %v315_v40 = vpop.xlane.xlu1 %314 }
  0xb8   :  { %v307_v41 = vpop.xlane.xlu0 %306  ;;  %v374_v13 = vmul.f32 0.00390625, %v315_v40 }
  0xb9   :  { %v370_v14 = vmul.f32 0.00390625, %v307_v41 }
  0xba   :  { %v475_v27 = vrot.slane %v374_v13, %v873_v2 }
  0xbb   :  { %v317_v42 = vpop.xlane.xlu1 %316  ;;  %v450_v28 = vrot.slane %v370_v14, %v873_v2 }
  0xbc   :  { %v309_v43 = vpop.xlane.xlu0 %308  ;;  %v375_v4 = vmul.f32 0.00390625, %v317_v42 }
  0xbd   :  { %v371_v5 = vmul.f32 0.00390625, %v309_v43 }
  0xbe   :  { %v479_v19 = vrot.slane %v375_v4, %v875_v3 }
  0xbf   :  { %v319_v44 = vpop.xlane.xlu1 %318  ;;  %v455_v20 = vrot.slane %v371_v5, %v875_v3 }
  0xc0   :  { %v311_v45 = vpop.xlane.xlu0 %310  ;;  %v376_v8 = vmul.f32 0.00390625, %v319_v44  ;;  %v480_v33 = vsel %vm456_vm1, %v479_v19, %v475_v27 }
  0xc1   :  { %v372_v9 = vmul.f32 0.00390625, %v311_v45  ;;  %v457_v34 = vsel %vm456_vm1, %v455_v20, %v450_v28 }
  0xc2   :  { %v484_v22 = vrot.slane %v376_v8, %v877_v6 }
  0xc3   :  { %v325_v46 = vpop.xlane.xlu1 %324  ;;  %v462_v23 = vrot.slane %v372_v9, %v877_v6 }
  0xc4   :  { %v323_v47 = vpop.xlane.xlu0 %322  ;;  %v379_v10 = vmul.f32 0.00390625, %v325_v46  ;;  %v485_v37 = vsel %vm463_vm2, %v484_v22, %v480_v33 }
  0xc5   :  { %v378_v11 = vmul.f32 0.00390625, %v323_v47  ;;  %v464_v38 = vsel %vm463_vm2, %v462_v23, %v457_v34 }
  0xc6   :  { %v498_v24 = vrot.slane %v379_v10, %v875_v3 }
  0xc7   :  { %v321_v48 = vpop.xlane.xlu1 %320  ;;  %v494_v25 = vrot.slane %v378_v11, %v873_v2 }
  0xc8   :  { %v313_v49 = vpop.xlane.xlu0 %312  ;;  %v377_v15 = vmul.f32 0.00390625, %v321_v48 }
  0xc9   :  { %v373_v16 = vmul.f32 0.00390625, %v313_v49  ;;  %v499_v39 = vsel %vm456_vm1, %v498_v24, %v494_v25 }
  0xca   :  { %v489_v29 = vrot.slane %v377_v15, %v879_v7 }
  0xcb   :  { %v331_v50 = vpop.xlane.xlu1 %330  ;;  %v469_v30 = vrot.slane %v373_v16, %v879_v7 }
  0xcc   :  { %v327_v51 = vpop.xlane.xlu0 %326  ;;  %v490_v41 = vsel %vm470_vm3, %v489_v29, %v485_v37  ;;  %v382_v43 = vmul.f32 0.00390625, %v331_v50 }
  0xcd   :  { %v380_v18 = vmul.f32 0.00390625, %v327_v51  ;;  %v471_v42 = vsel %vm470_vm3, %v469_v30, %v464_v38 }
  0xce   :  { %v606_v49 = vsel %vm605_vm4, %v490_v41, %v471_v42  ;;  %v513_v57 = vrot.slane %v382_v43, %v873_v2 }
  0xcf   :  { %v329_v52 = vpop.xlane.xlu1 %328  ;;  %v503_v32 = vrot.slane %v380_v18, %v877_v6 }
  0xd0   :  { %v333_v53 = vpop.xlane.xlu0 %332  ;;  %v381_v21 = vmul.f32 0.00390625, %v329_v52 }
  0xd1   :  { %v383_v36 = vmul.f32 0.00390625, %v333_v53  ;;  %v504_v46 = vsel %vm463_vm2, %v503_v32, %v499_v39 }
  0xd2   :  { %v508_v35 = vrot.slane %v381_v21, %v879_v7 }
  0xd3   :  { %v869_v55 = vpop.xlane.xlu1 %338  ;;  %v517_v48 = vrot.slane %v383_v36, %v875_v3 }
  0xd4   :  { %v335_v56 = vpop.xlane.xlu0 %334  ;;  %v509_v47 = vsel %vm470_vm3, %v508_v35, %v504_v46  ;;  %v386_v51 = vmul.f32 0.00390625, %v869_v55 }
  0xd5   :  { %v384_v44 = vmul.f32 0.00390625, %v335_v56  ;;  %v608_v62 = vsel %vm607_vm5, %v509_v47, %v606_v49  ;;  %v518_v8 = vsel %vm456_vm1, %v517_v48, %v513_v57 }
  0xd6   :  { %v532_v9 = vrot.slane %v386_v51, %v873_v2 }
  0xd7   :  { %v337_v58 = vpop.xlane.xlu1 %336  ;;  %v522_v60 = vrot.slane %v384_v44, %v877_v6 }
  0xd8   :  { %v341_v59 = vpop.xlane.xlu0 %340  ;;  %v385_v52 = vmul.f32 0.00390625, %v337_v58 }
  0xd9   :  { %v387_v53 = vmul.f32 0.00390625, %v341_v59  ;;  %v523_v14 = vsel %vm463_vm2, %v522_v60, %v518_v8 }
  0xda   :  { %v527_v10 = vrot.slane %v385_v52, %v879_v7 }
  0xdb   :  { %v871_v0 = vpop.xlane.xlu1 %346 }
  0xdc   :  { %v343_v1 = vpop.xlane.xlu0 %342  ;;  %v390_v55 = vmul.f32 0.00390625, %v871_v0  ;;  %v528_v25 = vsel %vm470_vm3, %v527_v10, %v523_v14 }
  0xdd   :  { %v388_v50 = vmul.f32 0.00390625, %v343_v1  ;;  %v536_v1 = vrot.slane %v387_v53, %v875_v3  ;;  %v610_v43 = vsel %vm609_vm6, %v528_v25, %v608_v62 }
  0xde   :  { %v551_v21 = vrot.slane %v390_v55, %v873_v2 }
  0xdf   :  { %v345_v12 = vpop.xlane.xlu1 %344 }
  0xe0   :  { %v349_v17 = vpop.xlane.xlu0 %348  ;;  %v389_v63 = vmul.f32 0.00390625, %v345_v12  ;;  %v541_v12 = vrot.slane %v388_v50, %v877_v6 }
  0xe1   :  { %v391_v56 = vmul.f32 0.00390625, %v349_v17 }
  0xe2   :  { %v546_v0 = vrot.slane %v389_v63, %v879_v7 }
  0xe3   :  { %v355_v26 = vpop.xlane.xlu1 %354  ;;  %v555_v15 = vrot.slane %v391_v56, %v875_v3 }
  0xe4   :  { %v351_v31 = vpop.xlane.xlu0 %350  ;;  %v394_v11 = vmul.f32 0.00390625, %v355_v26  ;;  %v537_v26 = vsel %vm456_vm1, %v536_v1, %v532_v9 }
  0xe5   :  { %v392_v4 = vmul.f32 0.00390625, %v351_v31  ;;  %v542_v30 = vsel %vm463_vm2, %v541_v12, %v537_v26  ;;  %v556_v31 = vsel %vm456_vm1, %v555_v15, %v551_v21 }
  0xe6   :  { %v570_v27 = vrot.slane %v394_v11, %v873_v2  ;;  %v547_v35 = vsel %vm470_vm3, %v546_v0, %v542_v30 }
  0xe7   :  { %v353_v40 = vpop.xlane.xlu1 %352  ;;  %v560_v18 = vrot.slane %v392_v4, %v877_v6 }
  0xe8   :  { %v357_v45 = vpop.xlane.xlu0 %356  ;;  %v393_v58 = vmul.f32 0.00390625, %v353_v40 }
  0xe9   :  { %v395_v5 = vmul.f32 0.00390625, %v357_v45  ;;  %v561_v36 = vsel %vm463_vm2, %v560_v18, %v556_v31  ;;  %v612_v45 = vsel %vm611_vm7, %v547_v35, %v610_v43 }
  0xea   :  { %v565_v22 = vrot.slane %v393_v58, %v879_v7 }
  0xeb   :  { %v363_v54 = vpop.xlane.xlu1 %362  ;;  %v574_v19 = vrot.slane %v395_v5, %v875_v3 }
  0xec   :  { %v359_v61 = vpop.xlane.xlu0 %358  ;;  %v398_v23 = vmul.f32 0.00390625, %v363_v54  ;;  %v566_v39 = vsel %vm470_vm3, %v565_v22, %v561_v36 }
  0xed   :  { %v396_v59 = vmul.f32 0.00390625, %v359_v61  ;;  %v575_v37 = vsel %vm456_vm1, %v574_v19, %v570_v27 }
  0xee   :  { %v589_v40 = vrot.slane %v398_v23, %v873_v2  ;;  %v614_v2 = vsel %vm613_vm8, %v566_v39, %v612_v45 }
  0xef   :  { %v361_v13 = vpop.xlane.xlu1 %360  ;;  %v579_v24 = vrot.slane %v396_v59, %v877_v6 }
  0xf0   :  { %v397_v16 = vmul.f32 0.00390625, %v361_v13  ;;  %v365_v17 = vpop.xlane.xlu0 %364 }
  0xf1   :  { %v399_v20 = vmul.f32 0.00390625, %v365_v17  ;;  %v580_v41 = vsel %vm463_vm2, %v579_v24, %v575_v37 }
  0xf2   :  { %v584_v28 = vrot.slane %v397_v16, %v879_v7 }
  0xf3   :  { %v369_v29 = vpop.xlane.xlu1 %368  ;;  %v593_v32 = vrot.slane %v399_v20, %v875_v3 }
  0xf4   :  { %v367_v33 = vpop.xlane.xlu0 %366  ;;  %v401_v34 = vmul.f32 0.00390625, %v369_v29  ;;  %v585_v3 = vsel %vm470_vm3, %v584_v28, %v580_v41 }
  0xf5   :  { %v400_v38 = vmul.f32 0.00390625, %v367_v33  ;;  %v594_v46 = vsel %vm456_vm1, %v593_v32, %v589_v40 }
  0xf6   :  { %v603_v42 = vrot.slane %v401_v34, %v879_v7  ;;  %v616_v7 = vsel %vm615_vm9, %v585_v3, %v614_v2 }
  0xf7   :  { %v598_v44 = vrot.slane %v400_v38, %v877_v6  ;;  %v709_v6 = vld [vmem:[%s959_s2] ss:$0 sm:$0xff] }
  0xf9   :  { %v599_v47 = vsel %vm463_vm2, %v598_v44, %v594_v46 }
  0xfa   :  { %v604_v48 = vsel %vm470_vm3, %v603_v42, %v599_v47 }
  0xfb   :  { %v618_v49 = vsel %vm617_vm10, %v604_v48, %v616_v7 }
  0xfc   :  { %725 = vmatmul.mubr.msk.f32.vlgmr.msra.gmra.mrb[0].mxu0 %vm619_vm11, %v618_v49 }
 0x1cf   :  { %v688_v51 = vpop.f32.mrb[0].mxu0 }
 0x1d0   :  { %v689_v52 = vadd.f32 %v709_v6, %v688_v51  ;;  %v726_v53 = vpop.f32.mrb[1].mxu0 }
 0x1d2   :  { %692 = vst [vmem:[#allocation8] sm:$0xff] %v689_v52 }
 0x1d3   :  { %798 = shalt.err (!%p795_p6)
}
 0x1d4   :  { %s799_s18 = scalar_lea.hbm %s960_s3, 128 }
 0x1d5   :  { %p800_p7 = scmp.ne.s32.totalorder %s960_s3, %s799_s18  ;;  %p803_p8 = scmp.lt.u32.totalorder %s799_s18, %s960_s3 }
 0x1d7   :  { %p805_p9 = pnand %p803_p8, %p800_p7 }
 0x1d9   :  { %808 = shalt.err (!%p805_p9)
}
 0x1da   :  { %702 = dma.vmem_to_hbm [thread:$0]  %s700_s14, 128, %s960_s3, [#allocation5]  }
 0x1db   :  { %813 = dma.done.wait [#allocation5], 128  }
 0x1dc   :  { %814 = vsyncadd [#allocation5], 4294967168 }
 0x1dd   :  { %706 = vsyncpa [#allocation4], 1 }
 0x1de   :  { %707 = vsyncpa [#allocation7], 1 }
 0x1df   :  { %708 = vsyncpa [#allocation5], 1 }

</bundles_post_ra>
